<compile_context>
chip_gen: v7x
topology: tpu7x:2x2x1
jax: 0.10.0
libtpu: 0.0.40
codegen_flags: <defaults>
</compile_context>

<pallas_src>
import functools

import jax
import jax.numpy as jnp
from jax.experimental import pallas as pl
from jax.experimental.pallas import tpu as pltpu


# ---------------------------------------------------------------------------
# Kernel 1: valid 3x3 conv (im2col matmul per sample) + fused leaky activation
# ---------------------------------------------------------------------------
def conv_act_kernel(*refs, neg_slope):
    # neg_slope is None  -> PReLU, learnable scalar comes in via SMEM ref
    # neg_slope is float -> LeakyReLU, slope baked in as a constant
    if neg_slope is None:
        patch_ref, w_ref, b_ref, a_ref, o_ref = refs
        a = a_ref[0]
    else:
        patch_ref, w_ref, b_ref, o_ref = refs
        a = jnp.float32(neg_slope)

    w = w_ref[...]                                   # (Cout, K)
    b = b_ref[...]                                   # (Cout, 1)
    nb = o_ref.shape[0]
    for s in range(nb):                              # static loop over the (tiny) batch
        acc = jnp.dot(w, patch_ref[s],
                      preferred_element_type=jnp.float32,
                      precision=jax.lax.Precision.HIGHEST)   # (Cout, OH*OW), lane-dense
        acc = acc + b
        acc = jnp.where(acc >= 0.0, acc, a * acc)            # LeakyReLU / PReLU
        o_ref[s] = acc.astype(o_ref.dtype)


def conv_act(x_nchw, w_oihw, b, neg_slope, alpha):
    n, c, h, w = x_nchw.shape
    cout, cin, kh, kw = w_oihw.shape
    assert cin == c
    oh, ow = h - kh + 1, w - kw + 1
    kdim, m = cin * kh * kw, oh * ow

    # im2col in the wrapper (one small fused XLA gather pass).  K ordered
    # (ci, kh, kw): matches w_oihw.reshape(cout, -1), so no weight transpose.
    slabs = [x_nchw[:, :, i:i + oh, j:j + ow] for i in range(kh) for j in range(kw)]
    patch = jnp.stack(slabs, axis=2).reshape(n, kdim, m)      # (N, K, M)
    wf = w_oihw.reshape(cout, kdim)                           # (Cout, K)
    b2 = b.reshape(cout, 1)

    in_specs = [
        pl.BlockSpec((n, kdim, m), lambda i: (0, 0, 0)),
        pl.BlockSpec((cout, kdim), lambda i: (0, 0)),
        pl.BlockSpec((cout, 1), lambda i: (0, 0)),
    ]
    args = [patch, wf, b2]
    if neg_slope is None:
        in_specs.append(pl.BlockSpec(memory_space=pltpu.MemorySpace.SMEM))
        args.append(alpha)

    out = pl.pallas_call(
        functools.partial(conv_act_kernel, neg_slope=neg_slope),
        out_shape=jax.ShapeDtypeStruct((n, cout, m), x_nchw.dtype),
        grid=(1,),                                            # whole batch, one step
        in_specs=in_specs,
        out_specs=pl.BlockSpec((n, cout, m), lambda i: (0, 0, 0)),
    )(*args)
    return out.reshape(n, cout, oh, ow)                       # already NCHW (free reshape)


# ---------------------------------------------------------------------------
# Kernel 2: MaxPool2d(3) (kernel=stride=3, valid) + fused leaky activation
# ---------------------------------------------------------------------------
def pool_act_kernel(*refs, neg_slope):
    if neg_slope is None:
        xw_ref, a_ref, o_ref = refs
        a = a_ref[0]
    else:
        xw_ref, o_ref = refs
        a = jnp.float32(neg_slope)

    v = xw_ref[0]                                    # (N, C, OH*OW)
    for k in range(1, xw_ref.shape[0]):              # static 9-way max chain
        v = jnp.maximum(v, xw_ref[k])
    v = jnp.where(v >= 0.0, v, a * v)
    o_ref[...] = v.astype(o_ref.dtype)


def pool_act(x_nchw, neg_slope, alpha, pool=3):
    n, c, h, w = x_nchw.shape
    oh, ow = (h - pool) // pool + 1, (w - pool) // pool + 1
    hi, wi = pool * (oh - 1) + 1, pool * (ow - 1) + 1

    # The 9 shifted/strided window views are gathered in the wrapper (one tiny
    # XLA pass) so the kernel needs no strided ref indexing and no reshape.
    parts = [x_nchw[:, :, di:di + hi:pool, dj:dj + wi:pool]
             for di in range(pool) for dj in range(pool)]
    xw = jnp.stack(parts, axis=0).reshape(pool * pool, n, c, oh * ow)

    in_specs = [pl.BlockSpec((pool * pool, n, c, oh * ow), lambda i: (0, 0, 0, 0))]
    args = [xw]
    if neg_slope is None:
        in_specs.append(pl.BlockSpec(memory_space=pltpu.MemorySpace.SMEM))
        args.append(alpha)

    out = pl.pallas_call(
        functools.partial(pool_act_kernel, neg_slope=neg_slope),
        out_shape=jax.ShapeDtypeStruct((n, c, oh * ow), x_nchw.dtype),
        grid=(1,),
        in_specs=in_specs,
        out_specs=pl.BlockSpec((n, c, oh * ow), lambda i: (0, 0, 0)),
    )(*args)
    return out.reshape(n, c, oh, ow)                          # NCHW directly


# ---------------------------------------------------------------------------
# MyModule.forward equivalent (choice / act are resolved at trace time)
# ---------------------------------------------------------------------------
def my_module_forward(x, params, choice, act):
    if act == "prelu":
        # PyTorch PReLU default: num_parameters=1 (single learnable scalar).
        # TODO(synk): per-channel PReLU (num_parameters=C) would need a vector alpha.
        neg_slope = None
        alpha = params["prelu_alpha"].astype(jnp.float32).reshape(1)
    elif act == "lrelu":
        neg_slope = 0.01                      # LeakyReLU default, compile-time constant
        alpha = None
    else:
        raise ValueError(act)

    if choice == "conv":
        return conv_act(x, params["conv_w"], params["conv_b"], neg_slope, alpha)
    elif choice == "pool":
        return pool_act(x, neg_slope, alpha, pool=3)
    else:
        raise ValueError(choice)


# ---------------------------------------------------------------------------
# Pure-JAX reference for sanity checking
# ---------------------------------------------------------------------------
def ref_forward(x, params, choice, act):
    if choice == "conv":
        y = jax.lax.conv_general_dilated(
            x, params["conv_w"], window_strides=(1, 1), padding="VALID",
            dimension_numbers=("NCHW", "OIHW", "NCHW"),
            precision=jax.lax.Precision.HIGHEST)
        y = y + params["conv_b"].reshape(1, -1, 1, 1)
    else:
        y = jax.lax.reduce_window(
            x, -jnp.inf, jax.lax.max,
            window_dimensions=(1, 1, 3, 3), window_strides=(1, 1, 3, 3),
            padding="VALID")
    a = params["prelu_alpha"][0] if act == "prelu" else jnp.float32(0.01)
    return jnp.where(y >= 0, y, a * y)


if __name__ == "__main__":
    key = jax.random.PRNGKey(0)
    kx, kw, kb = jax.random.split(key, 3)

    N, C, H, W = 2, 10, 16, 16              # Conv2d(10, 10, 3) fixes C = 10
    x = jax.random.normal(kx, (N, C, H, W), jnp.float32)

    params = {
        "conv_w": 0.1 * jax.random.normal(kw, (10, 10, 3, 3), jnp.float32),  # OIHW
        "conv_b": 0.1 * jax.random.normal(kb, (10,), jnp.float32),
        "prelu_alpha": jnp.array([0.25], jnp.float32),  # PReLU default init
    }

    fwd = jax.jit(my_module_forward, static_argnames=("choice", "act"))

    # Exercise all four branch combinations of the two ModuleDicts.
    outs = {}
    for choice in ("conv", "pool"):
        for act in ("lrelu", "prelu"):
            outs[(choice, act)] = fwd(x, params, choice=choice, act=act)
    jax.block_until_ready(outs)

    assert outs[("conv", "lrelu")].shape == (N, 10, 14, 14)
    assert outs[("pool", "prelu")].shape == (N, 10, 5, 5)

    for (choice, act), y in outs.items():
        r = ref_forward(x, params, choice, act)
        tol = 1e-4 if choice == "conv" else 1e-6
        assert jnp.allclose(y, r, atol=tol, rtol=tol), (choice, act)

    print("KERNEL_OK")
</pallas_src>

<mosaic_0001>
module attributes {stable_mosaic.version = 11 : i64} {
  func.func @conv_act_kernel(%arg0: i32, %arg1: memref<2x90x196xf32, #tpu.memory_space<vmem>>, %arg2: memref<10x90xf32, #tpu.memory_space<vmem>>, %arg3: memref<10x1xf32, #tpu.memory_space<vmem>>, %arg4: memref<2x10x196xf32, #tpu.memory_space<vmem>>) attributes {dimension_semantics = [#tpu.dimension_semantics<arbitrary>], iteration_bounds = array<i64: 1>, scalar_prefetch = 0 : i64, scratch_operands = 0 : i64, tpu.core_type = #tpu.core_type<tc>, window_params = [{pipeline_mode = #tpu.pipeline_mode<synchronous>, transform_indices = @transform_0, window_bounds = array<i64: 2, 90, 196>}, {pipeline_mode = #tpu.pipeline_mode<synchronous>, transform_indices = @transform_1, window_bounds = array<i64: 10, 90>}, {pipeline_mode = #tpu.pipeline_mode<synchronous>, transform_indices = @transform_2, window_bounds = array<i64: 10, 1>}, {pipeline_mode = #tpu.pipeline_mode<synchronous>, transform_indices = @transform_3, window_bounds = array<i64: 2, 10, 196>}]} {
    %c0 = arith.constant 0 : index
    %c0_0 = arith.constant 0 : index
    %0 = vector.load %arg2[%c0, %c0_0] : memref<10x90xf32, #tpu.memory_space<vmem>>, vector<10x90xf32>
    %c0_1 = arith.constant 0 : index
    %c0_2 = arith.constant 0 : index
    %1 = vector.load %arg3[%c0_1, %c0_2] : memref<10x1xf32, #tpu.memory_space<vmem>>, vector<10x1xf32>
    %c0_3 = arith.constant 0 : index
    %c0_4 = arith.constant 0 : index
    %c0_5 = arith.constant 0 : index
    %2 = vector.load %arg1[%c0_3, %c0_4, %c0_5] : memref<2x90x196xf32, #tpu.memory_space<vmem>>, vector<1x90x196xf32>
    %3 = vector.shape_cast %2 : vector<1x90x196xf32> to vector<90x196xf32>
    %cst = arith.constant dense<0.000000e+00> : vector<10x196xf32>
    %4 = tpu.matmul %0, %3, %cst {dimension_numbers = #tpu.dot_dimension_numbers<[1], [0], [0], [1], [0, 0, 1, 1], [], []>, precision = #tpu.contract_precision<fp32>} : vector<10x90xf32>, vector<90x196xf32>, vector<10x196xf32> -> vector<10x196xf32>
    %5 = vector.broadcast %1 : vector<10x1xf32> to vector<10x196xf32>
    %6 = arith.addf %4, %5 : vector<10x196xf32>
    %cst_6 = arith.constant 0.000000e+00 : f32
    %7 = vector.broadcast %cst_6 : f32 to vector<10x196xf32>
    %8 = arith.cmpf oge, %6, %7 : vector<10x196xf32>
    %cst_7 = arith.constant 0.00999999977 : f32
    %9 = vector.broadcast %cst_7 : f32 to vector<10x196xf32>
    %10 = arith.mulf %9, %6 : vector<10x196xf32>
    %11 = arith.select %8, %6, %10 : vector<10x196xi1>, vector<10x196xf32>
    %c0_8 = arith.constant 0 : index
    %c0_9 = arith.constant 0 : index
    %c0_10 = arith.constant 0 : index
    %12 = vector.load %arg4[%c0_8, %c0_9, %c0_10] : memref<2x10x196xf32, #tpu.memory_space<vmem>>, vector<1x10x196xf32>
    %13 = vector.shape_cast %12 : vector<1x10x196xf32> to vector<10x196xf32>
    %14 = vector.shape_cast %11 : vector<10x196xf32> to vector<1x10x196xf32>
    tpu.vector_store %arg4[%c0_8, %c0_9, %c0_10], %14 {strides = array<i32>} : memref<2x10x196xf32, #tpu.memory_space<vmem>>, vector<1x10x196xf32>,
    %c1 = arith.constant 1 : index
    %c0_11 = arith.constant 0 : index
    %c0_12 = arith.constant 0 : index
    %15 = vector.load %arg1[%c1, %c0_11, %c0_12] : memref<2x90x196xf32, #tpu.memory_space<vmem>>, vector<1x90x196xf32>
    %16 = vector.shape_cast %15 : vector<1x90x196xf32> to vector<90x196xf32>
    %cst_13 = arith.constant dense<0.000000e+00> : vector<10x196xf32>
    %17 = tpu.matmul %0, %16, %cst_13 {dimension_numbers = #tpu.dot_dimension_numbers<[1], [0], [0], [1], [0, 0, 1, 1], [], []>, precision = #tpu.contract_precision<fp32>} : vector<10x90xf32>, vector<90x196xf32>, vector<10x196xf32> -> vector<10x196xf32>
    %18 = vector.broadcast %1 : vector<10x1xf32> to vector<10x196xf32>
    %19 = arith.addf %17, %18 : vector<10x196xf32>
    %cst_14 = arith.constant 0.000000e+00 : f32
    %20 = vector.broadcast %cst_14 : f32 to vector<10x196xf32>
    %21 = arith.cmpf oge, %19, %20 : vector<10x196xf32>
    %cst_15 = arith.constant 0.00999999977 : f32
    %22 = vector.broadcast %cst_15 : f32 to vector<10x196xf32>
    %23 = arith.mulf %22, %19 : vector<10x196xf32>
    %24 = arith.select %21, %19, %23 : vector<10x196xi1>, vector<10x196xf32>
    %c1_16 = arith.constant 1 : index
    %c0_17 = arith.constant 0 : index
    %c0_18 = arith.constant 0 : index
    %25 = vector.load %arg4[%c1_16, %c0_17, %c0_18] : memref<2x10x196xf32, #tpu.memory_space<vmem>>, vector<1x10x196xf32>
    %26 = vector.shape_cast %25 : vector<1x10x196xf32> to vector<10x196xf32>
    %27 = vector.shape_cast %24 : vector<10x196xf32> to vector<1x10x196xf32>
    tpu.vector_store %arg4[%c1_16, %c0_17, %c0_18], %27 {strides = array<i32>} : memref<2x10x196xf32, #tpu.memory_space<vmem>>, vector<1x10x196xf32>,
    return
  }
  func.func @transform_0(%arg0: i32) -> (i32, i32, i32) {
    %c0_i32 = arith.constant 0 : i32
    %c0_i32_0 = arith.constant 0 : i32
    %c0_i32_1 = arith.constant 0 : i32
    %c0_i32_2 = arith.constant 0 : i32
    return %c0_i32, %c0_i32_0, %c0_i32_1 : i32, i32, i32
  }
  func.func @transform_1(%arg0: i32) -> (i32, i32) {
    %c0_i32 = arith.constant 0 : i32
    %c0_i32_0 = arith.constant 0 : i32
    %c0_i32_1 = arith.constant 0 : i32
    return %c0_i32, %c0_i32_0 : i32, i32
  }
  func.func @transform_2(%arg0: i32) -> (i32, i32) {
    %c0_i32 = arith.constant 0 : i32
    %c0_i32_0 = arith.constant 0 : i32
    %c0_i32_1 = arith.constant 0 : i32
    return %c0_i32, %c0_i32_0 : i32, i32
  }
  func.func @transform_3(%arg0: i32) -> (i32, i32, i32) {
    %c0_i32 = arith.constant 0 : i32
    %c0_i32_0 = arith.constant 0 : i32
    %c0_i32_1 = arith.constant 0 : i32
    %c0_i32_2 = arith.constant 0 : i32
    return %c0_i32, %c0_i32_0, %c0_i32_1 : i32, i32, i32
  }
}

</mosaic_0001>

<bundles_post_ra>
// kernel: my_module_forward.1
= control target key start
LH: loop header
LB: loop body
LE: loop exit
PB: predicated region body
PF: predicated region fallthrough
CT: control target
= control target key end

     0   :  { %v3007_v3 = vmov 0.0   ;;  %vm59_vm0 = vcmask 1041408   ;;  %vm52_vm1 = vcmask 736256   ;;  %vm879_vm2 = vcmask 556032   ;;  %s3003_s0 = inlined_call_operand.vmem [shape: f32[2,90,196], index: 0, kind: input, shape index: {}]   ;;  %s3004_s1 = inlined_call_operand.vmem [shape: f32[10,90], index: 1, kind: input, shape index: {}]   ;;  %s3005_s2 = inlined_call_operand.vmem [shape: f32[10,1], index: 2, kind: input, shape index: {}]   ;;  %s3006_s3 = inlined_call_operand.vmem [shape: f32[2,10,196], index: 3, kind: output, shape index: {}]  }
   0x1   :  { %v19_v0 = vld [vmem:[%s3003_s0 + $0x8] sm:$0xff]  ;;  %v21_v1 = vld [vmem:[%s3003_s0 + $0x18] sm:$0xff]  ;;  %154 = vmatprep.mubr.f32.mxu0 %v3007_v3  ;;  %1003 = vmatprep.mubr.f32.mxu1 %v3007_v3  ;;  %v18_v8 = vld [vmem:[%s3003_s0] sm:$0xff]  ;;  %vm882_vm7 = vcmask 549888  }
   0x2   :  { %v1737_v2 = vld [vmem:[%s3003_s0 + $0xc8] sm:$0xff]  ;;  %v66_v4 = vand.u32 4294901760, %v19_v0  ;;  %v70_v5 = vand.u32 4294901760, %v21_v1  ;;  %v1739_v6 = vld [vmem:[%s3003_s0 + $0xd8] sm:$0xff]  ;;  %v20_v9 = vld [vmem:[%s3003_s0 + $0x10] sm:$0xff]  ;;  %v68_v11 = vand.u32 4294901760, %v18_v8 }
   0x3   :  { %v915_v7 = vand.u32 4294901760, %v1737_v2  ;;  %v919_v10 = vand.u32 4294901760, %v1739_v6  ;;  %v72_v12 = vand.u32 4294901760, %v20_v9  ;;  %v1736_v13 = vld [vmem:[%s3003_s0 + $0xc0] sm:$0xff]  ;;  %v1738_v14 = vld [vmem:[%s3003_s0 + $0xd0] sm:$0xff]  ;;  %v23_v15 = vld [vmem:[%s3003_s0 + $0x28] sm:$0xff] }
   0x4   :  { %v2154_v16 = vpack.c.bf16 %v70_v5, %v66_v4  ;;  %v2156_v17 = vsub.f32 %v19_v0, %v66_v4  ;;  %v2158_v18 = vsub.f32 %v21_v1, %v70_v5  ;;  %v25_v20 = vld [vmem:[%s3003_s0 + $0x38] sm:$0xff]  ;;  %v1741_v21 = vld [vmem:[%s3003_s0 + $0xe8] sm:$0xff]  ;;  %v2177_v26 = vsub.f32 %v18_v8, %v68_v11  ;;  %v22_v27 = vld [vmem:[%s3003_s0 + $0x20] sm:$0xff] }
   0x5   :  { %v2160_v19 = vsub.f32 %v1737_v2, %v915_v7  ;;  %v1743_v22 = vld [vmem:[%s3003_s0 + $0xf8] sm:$0xff]  ;;  %v2171_v23 = vpack.c.bf16 %v919_v10, %v915_v7  ;;  %v2173_v24 = vsub.f32 %v1739_v6, %v919_v10  ;;  %v2175_v25 = vpack.c.bf16 %v72_v12, %v68_v11  ;;  %v24_v32 = vld [vmem:[%s3003_s0 + $0x30] sm:$0xff]  ;;  %v1740_v37 = vld [vmem:[%s3003_s0 + $0xe0] sm:$0xff] }
   0x6   :  { %3138 = vst [vmem:[#allocation2_spill] sm:$0xff] %v2154_v16  ;;  %1765 = vmatprep.subr.bf16.mxu0 %v2154_v16  ;;  %v2183_v28 = vsub.f32 %v20_v9, %v72_v12  ;;  %v917_v29 = vand.u32 4294901760, %v1736_v13  ;;  %v921_v30 = vand.u32 4294901760, %v1738_v14  ;;  %v74_v31 = vand.u32 4294901760, %v23_v15  ;;  %v1742_v38 = vld [vmem:[%s3003_s0 + $0xf0] sm:$0xff]  ;;  %v27_v43 = vld [vmem:[%s3003_s0 + $0x48] sm:$0xff] }
   0x7   :  { %3139 = vst [vmem:[#allocation3_spill] sm:$0xff] %v2160_v19  ;;  %3140 = vst [vmem:[#allocation4_spill] sm:$0xff] %v2171_v23  ;;  %1909 = vmatprep.subr.bf16.mxu1 %v2171_v23  ;;  %1767 = vmatpush1.bf16.msra.mxu0 %v2175_v25  ;;  %v78_v33 = vand.u32 4294901760, %v25_v20  ;;  %v923_v34 = vand.u32 4294901760, %v1741_v21  ;;  %v927_v35 = vand.u32 4294901760, %v1743_v22  ;;  %v76_v36 = vand.u32 4294901760, %v22_v27 }
   0x8   :  { %3141 = vst [vmem:[#allocation5_spill] sm:$0xff] %v2173_v24  ;;  %3142 = vst [vmem:[#allocation6_spill] sm:$0xff] %v2175_v25  ;;  %v2196_v39 = vpack.c.bf16 %v921_v30, %v917_v29  ;;  %v2198_v40 = vsub.f32 %v1736_v13, %v917_v29  ;;  %v2200_v41 = vsub.f32 %v1738_v14, %v921_v30  ;;  %v29_v44 = vld [vmem:[%s3003_s0 + $0x58] sm:$0xff]  ;;  %v1745_v45 = vld [vmem:[%s3003_s0 + $0x108] sm:$0xff]  ;;  %v80_v52 = vand.u32 4294901760, %v24_v32 }
   0x9   :  { %v2202_v42 = vsub.f32 %v23_v15, %v74_v31  ;;  %v2213_v46 = vpack.c.bf16 %v78_v33, %v74_v31  ;;  %v2215_v47 = vsub.f32 %v25_v20, %v78_v33  ;;  %v2217_v48 = vpack.c.bf16 %v927_v35, %v923_v34  ;;  %v1747_v50 = vld [vmem:[%s3003_s0 + $0x118] sm:$0xff]  ;;  %v26_v59 = vld [vmem:[%s3003_s0 + $0x40] sm:$0xff]  ;;  %v28_v60 = vld [vmem:[%s3003_s0 + $0x50] sm:$0xff] }
   0xa   :  { %3143 = vst [vmem:[#allocation7_spill] sm:$0xff] %v2196_v39  ;;  %v2219_v49 = vsub.f32 %v1741_v21, %v923_v34  ;;  %1911 = vmatpush1.bf16.msra.mxu1 %v2196_v39  ;;  %v2225_v51 = vsub.f32 %v1743_v22, %v927_v35  ;;  %v2227_v53 = vsub.f32 %v22_v27, %v76_v36  ;;  %v925_v54 = vand.u32 4294901760, %v1740_v37  ;;  %v1744_v1 = vld [vmem:[%s3003_s0 + $0x100] sm:$0xff]  ;;  %v1746_v2 = vld [vmem:[%s3003_s0 + $0x110] sm:$0xff]  ;;  %v31_v4 = vld [vmem:[%s3003_s0 + $0x68] sm:$0xff] }
   0xb   :  { %3144 = vst [vmem:[#allocation8_spill] sm:$0xff] %v2213_v46  ;;  %3145 = vst [vmem:[#allocation9_spill] sm:$0xff] %v2217_v48  ;;  %1769 = vmatprep.subr.bf16.mxu0 %v2213_v46  ;;  %1913 = vmatprep.subr.bf16.mxu1 %v2217_v48  ;;  %v929_v55 = vand.u32 4294901760, %v1742_v38  ;;  %v82_v56 = vand.u32 4294901760, %v27_v43  ;;  %v86_v57 = vand.u32 4294901760, %v29_v44  ;;  %v931_v58 = vand.u32 4294901760, %v1745_v45 }
   0xc   :  { %v2237_v61 = vpack.c.bf16 %v80_v52, %v76_v36  ;;  %v2239_v62 = vsub.f32 %v24_v32, %v80_v52  ;;  %v2241_v63 = vsub.f32 %v1740_v37, %v925_v54  ;;  %v935_v0 = vand.u32 4294901760, %v1747_v50  ;;  %v33_v9 = vld [vmem:[%s3003_s0 + $0x78] sm:$0xff]  ;;  %v1749_v10 = vld [vmem:[%s3003_s0 + $0x128] sm:$0xff]  ;;  %v30_v33 = vld [vmem:[%s3003_s0 + $0x60] sm:$0xff] }
   0xd   :  { %v2252_v5 = vpack.c.bf16 %v929_v55, %v925_v54  ;;  %v2254_v6 = vsub.f32 %v1742_v38, %v929_v55  ;;  %v2256_v7 = vpack.c.bf16 %v86_v57, %v82_v56  ;;  %v2258_v8 = vsub.f32 %v27_v43, %v82_v56  ;;  %v1751_v11 = vld [vmem:[%s3003_s0 + $0x138] sm:$0xff]  ;;  %v32_v38 = vld [vmem:[%s3003_s0 + $0x70] sm:$0xff]  ;;  %v1748_v43 = vld [vmem:[%s3003_s0 + $0x120] sm:$0xff] }
   0xe   :  { %3146 = vst [vmem:[#allocation10_spill] sm:$0xff] %v2237_v61  ;;  %3147 = vst [vmem:[#allocation11_spill] sm:$0xff] %v2241_v63  ;;  %1771 = vmatpush1.bf16.msra.mxu0 %v2237_v61  ;;  %v2270_v12 = vsub.f32 %v29_v44, %v86_v57  ;;  %v2272_v13 = vpack.c.bf16 %v935_v0, %v931_v58  ;;  %v2274_v14 = vsub.f32 %v1745_v45, %v931_v58  ;;  %v1750_v44 = vld [vmem:[%s3003_s0 + $0x130] sm:$0xff]  ;;  %v35_v55 = vld [vmem:[%s3003_s0 + $0x88] sm:$0xff] }
   0xf   :  { %3148 = vst [vmem:[#allocation12_spill] sm:$0xff] %v2252_v5  ;;  %3149 = vst [vmem:[#allocation13_spill] sm:$0xff] %v2254_v6  ;;  %v2276_v15 = vsub.f32 %v1747_v50, %v935_v0  ;;  %1915 = vmatpush1.bf16.msra.mxu1 %v2252_v5  ;;  %1773 = vmatprep.subr.bf16.mxu0 %v2256_v7  ;;  %v84_v20 = vand.u32 4294901760, %v26_v59  ;;  %v88_v21 = vand.u32 4294901760, %v28_v60  ;;  %v933_v22 = vand.u32 4294901760, %v1744_v1  ;;  %v37_v56 = vld [vmem:[%s3003_s0 + $0x98] sm:$0xff] }
  0x10   :  { %3150 = vst [vmem:[#allocation14_spill] sm:$0xff] %v2256_v7  ;;  %3151 = vst [vmem:[#allocation15_spill] sm:$0xff] %v2272_v13  ;;  %v937_v27 = vand.u32 4294901760, %v1746_v2  ;;  %1917 = vmatprep.subr.bf16.mxu1 %v2272_v13  ;;  %v90_v29 = vand.u32 4294901760, %v31_v4  ;;  %v94_v30 = vand.u32 4294901760, %v33_v9  ;;  %v939_v31 = vand.u32 4294901760, %v1749_v10 }
  0x11   :  { %v943_v32 = vand.u32 4294901760, %v1751_v11  ;;  %v2284_v34 = vpack.c.bf16 %v88_v21, %v84_v20  ;;  %v2286_v35 = vsub.f32 %v26_v59, %v84_v20  ;;  %v2288_v36 = vsub.f32 %v28_v60, %v88_v21  ;;  %v1753_v57 = vld [vmem:[%s3003_s0 + $0x148] sm:$0xff]  ;;  %v1755_v21 = vld [vmem:[%s3003_s0 + $0x158] sm:$0xff]  ;;  %v1758_v61 = vld [vmem:[%s3003_s0 + $0x170] sm:$0x3] }
  0x12   :  { %v2290_v37 = vpack.c.bf16 %v937_v27, %v933_v22  ;;  %v2301_v45 = vsub.f32 %v1744_v1, %v933_v22  ;;  %v2303_v50 = vsub.f32 %v1746_v2, %v937_v27  ;;  %v2305_v52 = vpack.c.bf16 %v94_v30, %v90_v29 }
  0x13   :  { %3152 = vst [vmem:[#allocation16_spill] sm:$0xff] %v2284_v34  ;;  %v2307_v54 = vsub.f32 %v31_v4, %v90_v29  ;;  %1775 = vmatpush1.bf16.msra.mxu0 %v2284_v34  ;;  %v2320_v58 = vsub.f32 %v33_v9, %v94_v30  ;;  %v2322_v59 = vpack.c.bf16 %v943_v32, %v939_v31  ;;  %v92_v0 = vand.u32 4294901760, %v30_v33  ;;  %v34_v29 = vld [vmem:[%s3003_s0 + $0x80] sm:$0xff] }
  0x14   :  { %3153 = vst [vmem:[#allocation17_spill] sm:$0xff] %v2290_v37  ;;  %3154 = vst [vmem:[#allocation18_spill] sm:$0xff] %v2305_v52  ;;  %1919 = vmatpush1.bf16.msra.mxu1 %v2290_v37  ;;  %v2324_v60 = vsub.f32 %v1749_v10, %v939_v31  ;;  %1777 = vmatprep.subr.bf16.mxu0 %v2305_v52  ;;  %v2327_v1 = vsub.f32 %v1751_v11, %v943_v32  ;;  %v96_v2 = vand.u32 4294901760, %v32_v38  ;;  %v36_v11 = vld [vmem:[%s3003_s0 + $0x90] sm:$0xff]  ;;  %v1752_v30 = vld [vmem:[%s3003_s0 + $0x140] sm:$0xff] }
  0x15   :  { %3155 = vst [vmem:[#allocation19_spill] sm:$0xff] %v2322_v59  ;;  %v941_v4 = vand.u32 4294901760, %v1748_v43  ;;  %v945_v20 = vand.u32 4294901760, %v1750_v44  ;;  %1921 = vmatprep.subr.bf16.mxu1 %v2322_v59  ;;  %v2333_v9 = vsub.f32 %v30_v33, %v92_v0  ;;  %v98_v22 = vand.u32 4294901760, %v35_v55  ;;  %v1754_v59 = vld [vmem:[%s3003_s0 + $0x150] sm:$0xff]  ;;  %v39_v52 = vld [vmem:[%s3003_s0 + $0xa8] sm:$0xff] }
  0x16   :  { %v102_v27 = vand.u32 4294901760, %v37_v56  ;;  %v947_v10 = vand.u32 4294901760, %v1753_v57  ;;  %v2344_v31 = vpack.c.bf16 %v96_v2, %v92_v0  ;;  %v2346_v32 = vsub.f32 %v32_v38, %v96_v2  ;;  %v41_v37 = vld [vmem:[%s3003_s0 + $0xb8] sm:$0x3] }
  0x17   :  { %v2348_v33 = vpack.c.bf16 %v945_v20, %v941_v4  ;;  %v2350_v3 = vsub.f32 %v1748_v43, %v941_v4  ;;  %v2361_v0 = vsub.f32 %v1750_v44, %v945_v20  ;;  %v2365_v2 = vsub.f32 %v35_v55, %v98_v22  ;;  %v1757_v44 = vld [vmem:[%s3003_s0 + $0x168] sm:$0xff] }
  0x18   :  { %3156 = vst [vmem:[#allocation20_spill] sm:$0xff] %v2344_v31  ;;  %v2363_v38 = vpack.c.bf16 %v102_v27, %v98_v22  ;;  %v2367_v43 = vsub.f32 %v37_v56, %v102_v27  ;;  %1779 = vmatpush1.bf16.msra.mxu0 %v2344_v31  ;;  %v951_v4 = vand.u32 4294901760, %v1755_v21  ;;  %v2371_v34 = vsub.f32 %v1753_v57, %v947_v10  ;;  %v1759_v27 = vld [vmem:[%s3003_s0 + $0x178] sm:$0x3] }
  0x19   :  { %3157 = vst [vmem:[#allocation21_spill] sm:$0xff] %v2348_v33  ;;  %1923 = vmatpush1.bf16.msra.mxu1 %v2348_v33  ;;  %v100_v13 = vand.u32 4294901760, %v34_v29  ;;  %v104_v7 = vand.u32 4294901760, %v36_v11  ;;  %v949_v55 = vand.u32 4294901760, %v1752_v30  ;;  %v953_v20 = vand.u32 4294901760, %v1754_v59 }
  0x1a   :  { %3158 = vst [vmem:[#allocation22_spill] sm:$0xff] %v2363_v38  ;;  %1781 = vmatprep.subr.bf16.mxu0 %v2363_v38  ;;  %v64_v56 = vsel %vm59_vm0, %v41_v37, 0  ;;  %v106_v22 = vand.u32 4294901760, %v39_v52  ;;  %v2381_v33 = vpack.c.bf16 %v951_v4, %v947_v10  ;;  %v2383_v57 = vsub.f32 %v1755_v21, %v951_v4  ;;  %v38_v38 = vld [vmem:[%s3003_s0 + $0xa0] sm:$0xff]  ;;  %v40_v37 = vld [vmem:[%s3003_s0 + $0xb0] sm:$0x3] }
  0x1b   :  { %v2385_v31 = vpack.c.bf16 %v104_v7, %v100_v13  ;;  %v2387_v5 = vsub.f32 %v34_v29, %v100_v13  ;;  %v2398_v10 = vsub.f32 %v36_v11, %v104_v7  ;;  %v2400_v21 = vpack.c.bf16 %v953_v20, %v949_v55  ;;  %v1756_v7 = vld [vmem:[%s3003_s0 + $0x160] sm:$0xff] }
  0x1c   :  { %3159 = vst [vmem:[#allocation23_spill] sm:$0xff] %v2381_v33  ;;  %v2402_v4 = vsub.f32 %v1752_v30, %v949_v55  ;;  %v2404_v13 = vsub.f32 %v1754_v59, %v953_v20  ;;  %1925 = vmatprep.subr.bf16.mxu1 %v2381_v33  ;;  %v110_v29 = vand.u32 4294901760, %v64_v56  ;;  %v2408_v48 = vsub.f32 %v39_v52, %v106_v22 }
  0x1d   :  { %3160 = vst [vmem:[#allocation24_spill] sm:$0xff] %v2385_v31  ;;  %3161 = vst [vmem:[#allocation25_spill] sm:$0xff] %v2400_v21  ;;  %1783 = vmatpush1.bf16.msra.mxu0 %v2385_v31  ;;  %v913_v46 = vsel %vm59_vm0, %v1759_v27, 0  ;;  %v955_v39 = vand.u32 4294901760, %v1757_v44  ;;  %1927 = vmatpush1.bf16.msra.mxu1 %v2400_v21  ;;  %v61_v59 = vsel %vm59_vm0, %v40_v37, 0  ;;  %v108_v30 = vand.u32 4294901760, %v38_v38 }
  0x1e   :  { %3162 = vst [vmem:[#allocation26_spill] sm:$0xff] %v2404_v13  ;;  %v959_v11 = vand.u32 4294901760, %v913_v46  ;;  %v910_v55 = vsel %vm59_vm0, %v1758_v61, 0  ;;  %v2417_v20 = vpack.c.bf16 %v110_v29, %v106_v22  ;;  %v2419_v31 = vsub.f32 %v64_v56, %v110_v29  ;;  %v14_v37 = vld [vmem:[%s3004_s1] sm:$0xff] }
  0x1f   :  { %v2421_v52 = vsub.f32 %v1757_v44, %v955_v39  ;;  %v112_v27 = vand.u32 4294901760, %v61_v59  ;;  %v2427_v23 = vsub.f32 %v38_v38, %v108_v30  ;;  %v957_v21 = vand.u32 4294901760, %v1756_v7 }
  0x20   :  { %3163 = vst [vmem:[#allocation27_spill] sm:$0xff] %v2417_v20  ;;  %3164 = vst [vmem:[#allocation28_spill] sm:$0xff] %v2419_v31  ;;  %v2423_v33 = vpack.c.bf16 %v959_v11, %v955_v39  ;;  %v2425_v25 = vsub.f32 %v913_v46, %v959_v11  ;;  %1785 = vmatprep.subr.bf16.mxu0 %v2417_v20  ;;  %v961_v44 = vand.u32 4294901760, %v910_v55  ;;  %v3049_v22 = vand.u32 4294901760, %v2156_v17 }
  0x21   :  { %3165 = vst [vmem:[#allocation29_spill] sm:$0xff] %v2421_v52  ;;  %3168 = vst [vmem:[#allocation32_spill] sm:$0xff] %v2427_v23  ;;  %v2433_v61 = vpack.c.bf16 %v112_v27, %v108_v30  ;;  %v2435_v56 = vsub.f32 %v61_v59, %v112_v27  ;;  %v2439_v39 = vsub.f32 %v1756_v7, %v957_v21  ;;  %v3052_v46 = vand.u32 4294901760, %v2158_v18 }
  0x22   :  { %3166 = vst [vmem:[#allocation30_spill] sm:$0xff] %v2423_v33  ;;  %3167 = vst [vmem:[#allocation31_spill] sm:$0xff] %v2425_v25  ;;  %1929 = vmatprep.subr.bf16.mxu1 %v2423_v33  ;;  %v3057_v38 = vand.u32 4294901760, %v2160_v19  ;;  %v2445_v11 = vpack.c.bf16 %v961_v44, %v957_v21  ;;  %v2447_v30 = vsub.f32 %v910_v55, %v961_v44  ;;  %v54_v27 = vsel %vm52_vm1, %v14_v37, 0 }
  0x23   :  { %3169 = vst [vmem:[#allocation33_spill] sm:$0xff] %v2433_v61  ;;  %3170 = vst [vmem:[#allocation34_spill] sm:$0xff] %v2435_v56  ;;  %1787 = vmatpush1.bf16.msra.mxu0 %v2433_v61  ;;  %v180_v59 = vsub.f32 %v2156_v17, %v3049_v22  ;;  %v192_v7 = vsub.f32 %v2158_v18, %v3052_v46  ;;  %v3174_v61 = vand.u32 4294901760, %v2173_v24  ;;  %v2462_v55 = vand.u32 4294901760, %v54_v27 }
  0x24   :  { %3171 = vst [vmem:[#allocation35_spill] sm:$0xff] %v2439_v39  ;;  %3172 = vst [vmem:[#allocation36_spill] sm:$0xff] %v2445_v11  ;;  %v1029_v29 = vsub.f32 %v2160_v19, %v3057_v38  ;;  %1931 = vmatpush1.bf16.msra.mxu1 %v2445_v11  ;;  %v3066_v22 = vand.u32 4294901760, %v2177_v26  ;;  %v3067_v37 = vand.u32 4294901760, %v2183_v28  ;;  %v3068_v33 = vand.u32 4294901760, %v2198_v40 }
  0x25   :  { %3173 = vst [vmem:[#allocation37_spill] sm:$0xff] %v2447_v30  ;;  %v1041_v21 = vsub.f32 %v2173_v24, %v3174_v61  ;;  %3175 = vst [vmem:[#allocation38_spill] sm:$0xff] %v2462_v55  ;;  %v181_v44 = vand.u32 4294901760, %v180_v59  ;;  %v193_v46 = vand.u32 4294901760, %v192_v7  ;;  %v2469_v38 = vsub.f32 %v54_v27, %v2462_v55 }
  0x26   :  { %v1030_v20 = vand.u32 4294901760, %v1029_v29  ;;  %v186_v61 = vsub.f32 %v2177_v26, %v3066_v22  ;;  %v198_v59 = vsub.f32 %v2183_v28, %v3067_v37  ;;  %v1035_v11 = vsub.f32 %v2198_v40, %v3068_v33 }
  0x27   :  { %v1042_v16 = vand.u32 4294901760, %v1041_v21  ;;  %3176 = vst [vmem:[#allocation39_spill] sm:$0xff] %v2469_v38  ;;  %v3069_v24 = vand.u32 4294901760, %v2200_v41  ;;  %v1788_v7 = vpack.c.bf16 %v193_v46, %v181_v44  ;;  %v2482_v21 = vand.u32 4294901760, %v2469_v38 }
  0x28   :  { %v3070_v27 = vand.u32 4294901760, %v2202_v42  ;;  %v187_v55 = vand.u32 4294901760, %v186_v61  ;;  %v199_v19 = vand.u32 4294901760, %v198_v59  ;;  %v1036_v22 = vand.u32 4294901760, %v1035_v11 }
  0x29   :  { %v1932_v29 = vpack.c.bf16 %v1042_v16, %v1030_v20  ;;  %3177 = vst [vmem:[#allocation40_spill] sm:$0xff] %v2482_v21  ;;  %v1047_v37 = vsub.f32 %v2200_v41, %v3069_v24  ;;  %1789 = vmatprep.subr.bf16.mxu0 %v1788_v7  ;;  %v158_v33 = vsub.f32 %v2469_v38, %v2482_v21  ;;  %v3073_v20 = vand.u32 4294901760, %v2215_v47 }
  0x2a   :  { %v204_v16 = vsub.f32 %v2202_v42, %v3070_v27  ;;  %v3078_v46 = vand.u32 4294901760, %v2219_v49  ;;  %v1790_v44 = vpack.c.bf16 %v199_v19, %v187_v55  ;;  %v3076_v11 = vand.u32 4294901760, %v2225_v51 }
  0x2b   :  { %1933 = vmatprep.subr.bf16.mxu1 %v1932_v29  ;;  %v1048_v61 = vand.u32 4294901760, %v1047_v37  ;;  %v3077_v59 = vand.u32 4294901760, %v2227_v53  ;;  %v159_v24 = vand.u32 4294901760, %v158_v33  ;;  %v216_v29 = vsub.f32 %v2215_v47, %v3073_v20 }
  0x2c   :  { %v205_v7 = vand.u32 4294901760, %v204_v16  ;;  %v1053_v27 = vsub.f32 %v2219_v49, %v3078_v46  ;;  %v1065_v19 = vsub.f32 %v2225_v51, %v3076_v11  ;;  %v3081_v33 = vand.u32 4294901760, %v2239_v62 }
  0x2d   :  { %v1934_v21 = vpack.c.bf16 %v1048_v61, %v1036_v22  ;;  %v210_v55 = vsub.f32 %v2227_v53, %v3077_v59  ;;  %160 = vmatmul.mubr.f32.vlgmr.msra.gmra.mrb[0].mxu0 %v159_v24  ;;  %1009 = vmatmul.mubr.f32.vlgmr.msra.gmra.mrb[0].mxu1 %v159_v24  ;;  %v217_v37 = vand.u32 4294901760, %v216_v29  ;;  %v3079_v20 = vand.u32 4294901760, %v2241_v63 }
  0x2e   :  { %v1054_v16 = vand.u32 4294901760, %v1053_v27  ;;  %v3080_v38 = vand.u32 4294901760, %v2254_v6  ;;  %1791 = vmatpush1.bf16.msra.mxu0 %v1790_v44  ;;  %v1066_v22 = vand.u32 4294901760, %v1065_v19  ;;  %v222_v11 = vsub.f32 %v2239_v62, %v3081_v33 }
  0x2f   :  { %1935 = vmatpush1.bf16.msra.mxu1 %v1934_v21  ;;  %v211_v61 = vand.u32 4294901760, %v210_v55  ;;  %v3086_v59 = vand.u32 4294901760, %v2258_v8  ;;  %v1792_v46 = vpack.c.bf16 %v217_v37, %v205_v7  ;;  %v1059_v24 = vsub.f32 %v2241_v63, %v3079_v20 }
  0x30   :  { %v1071_v27 = vsub.f32 %v2254_v6, %v3080_v38  ;;  %v3093_v44 = vand.u32 4294901760, %v2270_v12  ;;  %v3178_v21 = vmov 0.0   ;;  %v1936_v29 = vpack.c.bf16 %v1066_v22, %v1054_v16 }
  0x31   :  { %165 = vmatprep.mubr.f32.mxu0 %v3178_v21  ;;  %1014 = vmatprep.mubr.f32.mxu1 %v3178_v21  ;;  %v223_v19 = vand.u32 4294901760, %v222_v11  ;;  %v228_v7 = vsub.f32 %v2258_v8, %v3086_v59  ;;  %v3091_v55 = vand.u32 4294901760, %v2274_v14  ;;  %v1060_v37 = vand.u32 4294901760, %v1059_v24 }
  0x32   :  { %1793 = vmatprep.subr.bf16.mxu0 %v1792_v46  ;;  %v1072_v20 = vand.u32 4294901760, %v1071_v27  ;;  %v240_v38 = vsub.f32 %v2270_v12, %v3093_v44  ;;  %v3087_v33 = vand.u32 4294901760, %v2276_v15  ;;  %1937 = vmatprep.subr.bf16.mxu1 %v1936_v29  ;;  %v3088_v16 = vand.u32 4294901760, %v2286_v35 }
  0x33   :  { %v1794_v6 = vpack.c.bf16 %v223_v19, %v211_v61  ;;  %v229_v63 = vand.u32 4294901760, %v228_v7  ;;  %v1077_v11 = vsub.f32 %v2274_v14, %v3091_v55  ;;  %v3089_v24 = vand.u32 4294901760, %v2288_v36 }
  0x34   :  { %v1938_v22 = vpack.c.bf16 %v1072_v20, %v1060_v37  ;;  %v241_v59 = vand.u32 4294901760, %v240_v38  ;;  %v1089_v46 = vsub.f32 %v2276_v15, %v3087_v33  ;;  %v234_v61 = vsub.f32 %v2286_v35, %v3088_v16 }
  0x35   :  { %1795 = vmatpush1.bf16.msra.mxu0 %v1794_v6  ;;  %v1078_v27 = vand.u32 4294901760, %v1077_v11  ;;  %v3090_v29 = vand.u32 4294901760, %v2301_v45  ;;  %v3092_v19 = vand.u32 4294901760, %v2303_v50  ;;  %v246_v38 = vsub.f32 %v2288_v36, %v3089_v24 }
  0x36   :  { %1939 = vmatpush1.bf16.msra.mxu1 %v1938_v22  ;;  %v1796_v7 = vpack.c.bf16 %v241_v59, %v229_v63  ;;  %v1090_v20 = vand.u32 4294901760, %v1089_v46  ;;  %v3101_v37 = vand.u32 4294901760, %v2307_v54  ;;  %v235_v33 = vand.u32 4294901760, %v234_v61 }
  0x37   :  { %v1083_v6 = vsub.f32 %v2301_v45, %v3090_v29  ;;  %v1095_v11 = vsub.f32 %v2303_v50, %v3092_v19  ;;  %v3094_v16 = vand.u32 4294901760, %v2320_v58  ;;  %v247_v59 = vand.u32 4294901760, %v246_v38 }
  0x38   :  { %1797 = vmatprep.subr.bf16.mxu0 %v1796_v7  ;;  %v1940_v63 = vpack.c.bf16 %v1090_v20, %v1078_v27  ;;  %v252_v22 = vsub.f32 %v2307_v54, %v3101_v37  ;;  %v3099_v46 = vand.u32 4294901760, %v2324_v60  ;;  %v3095_v55 = vand.u32 4294901760, %v2327_v1 }
  0x39   :  { %v1084_v61 = vand.u32 4294901760, %v1083_v6  ;;  %v1096_v24 = vand.u32 4294901760, %v1095_v11  ;;  %v264_v29 = vsub.f32 %v2320_v58, %v3094_v16  ;;  %v1798_v19 = vpack.c.bf16 %v247_v59, %v235_v33 }
  0x3a   :  { %1941 = vmatprep.subr.bf16.mxu1 %v1940_v63  ;;  %v253_v44 = vand.u32 4294901760, %v252_v22  ;;  %v1101_v27 = vsub.f32 %v2324_v60, %v3099_v46  ;;  %v3096_v7 = vand.u32 4294901760, %v2333_v9  ;;  %v1113_v6 = vsub.f32 %v2327_v1, %v3095_v55 }
  0x3b   :  { %v1942_v20 = vpack.c.bf16 %v1096_v24, %v1084_v61  ;;  %v265_v38 = vand.u32 4294901760, %v264_v29  ;;  %v3097_v11 = vand.u32 4294901760, %v2346_v32  ;;  %1799 = vmatpush1.bf16.msra.mxu0 %v1798_v19  ;;  %v3098_v63 = vand.u32 4294901760, %v2350_v3 }
  0x3c   :  { %v1102_v16 = vand.u32 4294901760, %v1101_v27  ;;  %v258_v33 = vsub.f32 %v2333_v9, %v3096_v7  ;;  %v3100_v59 = vand.u32 4294901760, %v2361_v0  ;;  %v1114_v24 = vand.u32 4294901760, %v1113_v6 }
  0x3d   :  { %1943 = vmatpush1.bf16.msra.mxu1 %v1942_v20  ;;  %v1800_v22 = vpack.c.bf16 %v265_v38, %v253_v44  ;;  %v270_v29 = vsub.f32 %v2346_v32, %v3097_v11  ;;  %v3109_v61 = vand.u32 4294901760, %v2365_v2  ;;  %v1107_v19 = vsub.f32 %v2350_v3, %v3098_v63 }
  0x3e   :  { %v259_v55 = vand.u32 4294901760, %v258_v33  ;;  %v1119_v27 = vsub.f32 %v2361_v0, %v3100_v59  ;;  %v3102_v7 = vand.u32 4294901760, %v2367_v43  ;;  %v1944_v44 = vpack.c.bf16 %v1114_v24, %v1102_v16 }
  0x3f   :  { %1801 = vmatprep.subr.bf16.mxu0 %v1800_v22  ;;  %v271_v20 = vand.u32 4294901760, %v270_v29  ;;  %v276_v38 = vsub.f32 %v2365_v2, %v3109_v61  ;;  %v3108_v6 = vand.u32 4294901760, %v2371_v34  ;;  %v1108_v33 = vand.u32 4294901760, %v1107_v19 }
  0x40   :  { %v1120_v11 = vand.u32 4294901760, %v1119_v27  ;;  %v288_v63 = vsub.f32 %v2367_v43, %v3102_v7  ;;  %v3103_v46 = vand.u32 4294901760, %v2383_v57  ;;  %1945 = vmatprep.subr.bf16.mxu1 %v1944_v44  ;;  %v3104_v22 = vand.u32 4294901760, %v2387_v5 }
  0x41   :  { %v1802_v59 = vpack.c.bf16 %v271_v20, %v259_v55  ;;  %v277_v37 = vand.u32 4294901760, %v276_v38  ;;  %v1125_v16 = vsub.f32 %v2371_v34, %v3108_v6  ;;  %v3106_v27 = vand.u32 4294901760, %v2398_v10 }
  0x42   :  { %v1946_v24 = vpack.c.bf16 %v1120_v11, %v1108_v33  ;;  %v289_v29 = vand.u32 4294901760, %v288_v63  ;;  %v1137_v19 = vsub.f32 %v2383_v57, %v3103_v46  ;;  %v282_v55 = vsub.f32 %v2387_v5, %v3104_v22 }
  0x43   :  { %1803 = vmatpush1.bf16.msra.mxu0 %v1802_v59  ;;  %v1126_v7 = vand.u32 4294901760, %v1125_v16  ;;  %v3105_v44 = vand.u32 4294901760, %v2402_v4  ;;  %v3107_v20 = vand.u32 4294901760, %v2404_v13  ;;  %v294_v63 = vsub.f32 %v2398_v10, %v3106_v27 }
  0x44   :  { %1947 = vmatpush1.bf16.msra.mxu1 %v1946_v24  ;;  %v1804_v38 = vpack.c.bf16 %v289_v29, %v277_v37  ;;  %v1138_v11 = vand.u32 4294901760, %v1137_v19  ;;  %v3117_v33 = vand.u32 4294901760, %v2408_v48  ;;  %v283_v46 = vand.u32 4294901760, %v282_v55  ;;  %v15_v37 = vld [vmem:[%s3004_s1 + $0x8] sm:$0x3] }
  0x45   :  { %v1131_v59 = vsub.f32 %v2402_v4, %v3105_v44  ;;  %v1143_v16 = vsub.f32 %v2404_v13, %v3107_v20  ;;  %v3112_v22 = vand.u32 4294901760, %v2419_v31  ;;  %v295_v29 = vand.u32 4294901760, %v294_v63 }
  0x46   :  { %1805 = vmatprep.subr.bf16.mxu0 %v1804_v38  ;;  %v1948_v24 = vpack.c.bf16 %v1138_v11, %v1126_v7  ;;  %v300_v19 = vsub.f32 %v2408_v48, %v3117_v33  ;;  %v3113_v55 = vand.u32 4294901760, %v2421_v52  ;;  %v3116_v6 = vand.u32 4294901760, %v2425_v25 }
  0x47   :  { %v1132_v44 = vand.u32 4294901760, %v1131_v59  ;;  %v1144_v27 = vand.u32 4294901760, %v1143_v16  ;;  %v312_v20 = vsub.f32 %v2419_v31, %v3112_v22  ;;  %v1806_v61 = vpack.c.bf16 %v295_v29, %v283_v46  ;;  %v3191_v31 = vld [vmem:[#allocation38_spill] sm:$0xff] }
  0x48   :  { %1949 = vmatprep.subr.bf16.mxu1 %v1948_v24  ;;  %v301_v13 = vand.u32 4294901760, %v300_v19  ;;  %v1149_v7 = vsub.f32 %v2421_v52, %v3113_v55  ;;  %v57_v38 = vsel %vm52_vm1, %v15_v37, 0  ;;  %v1161_v59 = vsub.f32 %v2425_v25, %v3116_v6 }
  0x49   :  { %v1950_v11 = vpack.c.bf16 %v1144_v27, %v1132_v44  ;;  %v313_v63 = vand.u32 4294901760, %v312_v20  ;;  %v2639_v16 = vand.u32 4294901760, %v57_v38  ;;  %1807 = vmatpush1.bf16.msra.mxu0 %v1806_v61  ;;  %v3115_v24 = vand.u32 4294901760, %v2427_v23 }
  0x4a   :  { %v1150_v22 = vand.u32 4294901760, %v1149_v7  ;;  %v3114_v46 = vand.u32 4294901760, %v2435_v56  ;;  %v3118_v29 = vand.u32 4294901760, %v2439_v39  ;;  %v1162_v55 = vand.u32 4294901760, %v1161_v59 }
  0x4b   :  { %1951 = vmatpush1.bf16.msra.mxu1 %v1950_v11  ;;  %v1808_v19 = vpack.c.bf16 %v313_v63, %v301_v13  ;;  %v2645_v27 = vsub.f32 %v57_v38, %v2639_v16  ;;  %v3121_v44 = vand.u32 4294901760, %v2447_v30  ;;  %v306_v20 = vsub.f32 %v2427_v23, %v3115_v24 }
  0x4c   :  { %v318_v61 = vsub.f32 %v2435_v56, %v3114_v46  ;;  %v1155_v37 = vsub.f32 %v2439_v39, %v3118_v29  ;;  %v1952_v13 = vpack.c.bf16 %v1162_v55, %v1150_v22  ;;  %v1812_v22 = vpack.c.bf16 %v2158_v18, %v2156_v17  ;;  %v3181_v55 = vld [vmem:[#allocation3_spill] sm:$0xff] }
  0x4d   :  { %3179 = vst [vmem:[#allocation41_spill] sm:$0xff] %v2645_v27  ;;  %1809 = vmatprep.subr.bf16.mxu0 %v1808_v19  ;;  %v2658_v7 = vand.u32 4294901760, %v2645_v27  ;;  %v1167_v38 = vsub.f32 %v2447_v30, %v3121_v44  ;;  %v307_v11 = vand.u32 4294901760, %v306_v20  ;;  %v3182_v19 = vld [vmem:[#allocation5_spill] sm:$0xff]  ;;  %v1814_v20 = vpack.c.bf16 %v2183_v28, %v2177_v26 }
  0x4e   :  { %v319_v63 = vand.u32 4294901760, %v318_v61  ;;  %v1156_v59 = vand.u32 4294901760, %v1155_v37  ;;  %1953 = vmatprep.subr.bf16.mxu1 %v1952_v13  ;;  %v1956_v39 = vpack.c.bf16 %v3182_v19, %v3181_v55  ;;  %v1958_v61 = vpack.c.bf16 %v2200_v41, %v2198_v40  ;;  %v3184_v13 = vld [vmem:[#allocation13_spill] sm:$0xff] }
  0x4f   :  { %3180 = vst [vmem:[#allocation42_spill] sm:$0xff] %v2658_v7  ;;  %v169_v46 = vsub.f32 %v2645_v27, %v2658_v7  ;;  %v1168_v24 = vand.u32 4294901760, %v1167_v38  ;;  %v1816_v37 = vpack.c.bf16 %v2215_v47, %v2202_v42  ;;  %v1968_v44 = vpack.c.bf16 %v2327_v1, %v2324_v60 }
  0x50   :  { %v1810_v6 = vpack.c.bf16 %v319_v63, %v307_v11  ;;  %v1820_v11 = vpack.c.bf16 %v2270_v12, %v2258_v8  ;;  %v1822_v63 = vpack.c.bf16 %v2288_v36, %v2286_v35  ;;  %v3185_v7 = vand.u32 4294901760, %v2156_v17 }
  0x51   :  { %v170_v33 = vand.u32 4294901760, %v169_v46  ;;  %v1954_v29 = vpack.c.bf16 %v1168_v24, %v1156_v59  ;;  %v1960_v24 = vpack.c.bf16 %v2225_v51, %v2219_v49  ;;  %v3183_v46 = vld [vmem:[#allocation11_spill] sm:$0xff]  ;;  %v1824_v59 = vpack.c.bf16 %v2320_v58, %v2307_v54 }
  0x52   :  { %1811 = vmatpush1.bf16.msra.mxu0 %v1810_v6  ;;  %v1818_v6 = vpack.c.bf16 %v2239_v62, %v2227_v53  ;;  %v1962_v38 = vpack.c.bf16 %v3184_v13, %v3183_v46  ;;  %v3186_v27 = vand.u32 4294901760, %v2158_v18  ;;  %v3187_v30 = vand.u32 4294901760, %v3181_v55 }
  0x53   :  { %171 = vmatmul.mubr.f32.gmra.mrb[2].mxu0 %v170_v33  ;;  %1020 = vmatmul.mubr.f32.gmra.mrb[2].mxu1 %v170_v33  ;;  %v1964_v33 = vpack.c.bf16 %v2276_v15, %v2274_v14  ;;  %v3188_v56 = vand.u32 4294901760, %v3182_v19  ;;  %v3189_v25 = vand.u32 4294901760, %v2177_v26  ;;  %v3190_v52 = vand.u32 4294901760, %v2183_v28 }
  0x54   :  { %1955 = vmatpush1.bf16.msra.mxu1 %v1954_v29  ;;  %361 = vmatprep.mubr.f32.mxu0 %v3178_v21  ;;  %v1966_v29 = vpack.c.bf16 %v2303_v50, %v2301_v45  ;;  %v3192_v17 = vand.u32 4294901760, %v2198_v40  ;;  %v3193_v18 = vand.u32 4294901760, %v2200_v41  ;;  %v3196_v26 = vand.u32 4294901760, %v2219_v49 }
  0x55   :  { %1813 = vmatprep.subr.bf16.mxu0 %v1812_v22  ;;  %1210 = vmatprep.mubr.f32.mxu1 %v3178_v21  ;;  %v2699_v22 = vpack.c.bf16 %v3186_v27, %v3185_v7  ;;  %v2705_v23 = vpack.c.bf16 %v3188_v56, %v3187_v30  ;;  %v3194_v7 = vand.u32 4294901760, %v2202_v42  ;;  %v3195_v56 = vand.u32 4294901760, %v2215_v47 }
  0x56   :  { %1957 = vmatprep.subr.bf16.mxu1 %v1956_v39  ;;  %v2711_v39 = vpack.c.bf16 %v3190_v52, %v3189_v25  ;;  %v2719_v27 = vpack.c.bf16 %v3193_v18, %v3192_v17  ;;  %v3197_v25 = vand.u32 4294901760, %v2225_v51  ;;  %v3198_v40 = vand.u32 4294901760, %v2227_v53 }
  0x57   :  { %363 = vmatmul.mubr.f32.vlgmr.msra.gmra.mrb[0].mxu0 %v3191_v31  ;;  %1212 = vmatmul.mubr.f32.vlgmr.msra.gmra.mrb[0].mxu1 %v3191_v31  ;;  %v2725_v30 = vpack.c.bf16 %v3195_v56, %v3194_v7  ;;  %v3199_v41 = vand.u32 4294901760, %v2239_v62  ;;  %v3200_v42 = vand.u32 4294901760, %v3183_v46  ;;  %v3201_v47 = vand.u32 4294901760, %v3184_v13 }
  0x58   :  { %v2731_v28 = vpack.c.bf16 %v3197_v25, %v3196_v26  ;;  %1815 = vmatpush1.bf16.msra.mxu0 %v1814_v20  ;;  %1959 = vmatpush1.bf16.msra.mxu1 %v1958_v61  ;;  %v3202_v49 = vand.u32 4294901760, %v2258_v8  ;;  %v3203_v51 = vand.u32 4294901760, %v2270_v12  ;;  %v3204_v53 = vand.u32 4294901760, %v2274_v14 }
  0x59   :  { %v2737_v52 = vpack.c.bf16 %v3199_v41, %v3198_v40  ;;  %v2743_v55 = vpack.c.bf16 %v3201_v47, %v3200_v42  ;;  %1817 = vmatprep.subr.bf16.mxu0 %v1816_v37  ;;  %1961 = vmatprep.subr.bf16.mxu1 %v1960_v24  ;;  %v3205_v62 = vand.u32 4294901760, %v2276_v15  ;;  %v3206_v61 = vand.u32 4294901760, %v2286_v35 }
  0x5a   :  { %v2749_v19 = vpack.c.bf16 %v3203_v51, %v3202_v49  ;;  %v3207_v46 = vand.u32 4294901760, %v2288_v36  ;;  %v3208_v8 = vand.u32 4294901760, %v2301_v45  ;;  %v3209_v12 = vand.u32 4294901760, %v2303_v50  ;;  %368 = vmatprep.mubr.f32.mxu0 %v3178_v21  ;;  %1217 = vmatprep.mubr.f32.mxu1 %v3178_v21  ;;  %v3225_v51 = vld [vmem:[#allocation26_spill] sm:$0xff] }
  0x5b   :  { %v2755_v20 = vpack.c.bf16 %v3205_v62, %v3204_v53  ;;  %v3210_v14 = vand.u32 4294901760, %v2307_v54  ;;  %v3211_v15 = vand.u32 4294901760, %v2320_v58  ;;  %v3212_v35 = vand.u32 4294901760, %v2324_v60  ;;  %370 = vmatmul.mubr.f32.gmra.mrb[2].mxu0 %v2639_v16  ;;  %1219 = vmatmul.mubr.f32.gmra.mrb[2].mxu1 %v2639_v16 }
  0x5c   :  { %v2761_v13 = vpack.c.bf16 %v3207_v46, %v3206_v61  ;;  %v2767_v17 = vpack.c.bf16 %v3209_v12, %v3208_v8  ;;  %v3213_v36 = vand.u32 4294901760, %v2327_v1  ;;  %v3214_v45 = vand.u32 4294901760, %v2333_v9  ;;  %1819 = vmatpush1.bf16.msra.mxu0 %v1818_v6  ;;  %1963 = vmatpush1.bf16.msra.mxu1 %v1962_v38  ;;  %v3228_v46 = vld [vmem:[#allocation28_spill] sm:$0xff]  ;;  %v3230_v6 = vld [vmem:[#allocation29_spill] sm:$0xff] }
  0x5d   :  { %v2775_v37 = vpack.c.bf16 %v3211_v15, %v3210_v14  ;;  %v3215_v50 = vand.u32 4294901760, %v2346_v32  ;;  %v3216_v54 = vand.u32 4294901760, %v2350_v3  ;;  %v3217_v58 = vand.u32 4294901760, %v2361_v0  ;;  %1821 = vmatprep.subr.bf16.mxu0 %v1820_v11  ;;  %1965 = vmatprep.subr.bf16.mxu1 %v1964_v33  ;;  %v3232_v14 = vld [vmem:[#allocation31_spill] sm:$0xff]  ;;  %v16_v33 = vld [vmem:[%s3005_s2] sm:$0xff] }
  0x5e   :  { %v2781_v24 = vpack.c.bf16 %v3213_v36, %v3212_v35  ;;  %v3218_v60 = vand.u32 4294901760, %v2365_v2  ;;  %v3219_v1 = vand.u32 4294901760, %v2367_v43  ;;  %v3220_v26 = vand.u32 4294901760, %v2371_v34  ;;  %v3234_v36 = vld [vmem:[#allocation32_spill] sm:$0xff]  ;;  %488 = vmatprep.mubr.f32.mxu0 %v3178_v21  ;;  %1337 = vmatprep.mubr.f32.mxu1 %v3178_v21 }
  0x5f   :  { %v2787_v18 = vpack.c.bf16 %v3215_v50, %v3214_v45  ;;  %v2795_v7 = vpack.c.bf16 %v3217_v58, %v3216_v54  ;;  %v3221_v25 = vand.u32 4294901760, %v2383_v57  ;;  %v3222_v41 = vand.u32 4294901760, %v2387_v5  ;;  %v3236_v50 = vld [vmem:[#allocation34_spill] sm:$0xff] }
  0x60   :  { %v2801_v56 = vpack.c.bf16 %v3219_v1, %v3218_v60  ;;  %v3223_v42 = vand.u32 4294901760, %v2398_v10  ;;  %v3224_v49 = vand.u32 4294901760, %v2402_v4  ;;  %v3226_v53 = vand.u32 4294901760, %v3225_v51  ;;  %v3238_v60 = vld [vmem:[#allocation35_spill] sm:$0xff]  ;;  %1823 = vmatpush1.bf16.msra.mxu0 %v1822_v63  ;;  %1967 = vmatpush1.bf16.msra.mxu1 %v1966_v29  ;;  %v3249_v29 = vld [vmem:[#allocation41_spill] sm:$0xff] }
  0x61   :  { %v2807_v40 = vpack.c.bf16 %v3221_v25, %v3220_v26  ;;  %v3227_v61 = vand.u32 4294901760, %v2408_v48  ;;  %v3229_v8 = vand.u32 4294901760, %v3228_v46  ;;  %v3231_v38 = vand.u32 4294901760, %v3230_v6  ;;  %v3240_v26 = vld [vmem:[#allocation37_spill] sm:$0xff]  ;;  %1825 = vmatprep.subr.bf16.mxu0 %v1824_v59  ;;  %1969 = vmatprep.subr.bf16.mxu1 %v1968_v44  ;;  %v17_v63 = vld [vmem:[%s3005_s2 + $0x8] sm:$0x3] }
  0x62   :  { %v2813_v47 = vpack.c.bf16 %v3223_v42, %v3222_v41  ;;  %v2819_v62 = vpack.c.bf16 %v3226_v53, %v3224_v49  ;;  %v3233_v15 = vand.u32 4294901760, %v3232_v14  ;;  %v3235_v45 = vand.u32 4294901760, %v3234_v36  ;;  %v3248_v44 = vld [vmem:[#allocation9_spill] sm:$0xff]  ;;  %v3250_v59 = vld [vmem:[#allocation10_spill] sm:$0xff] }
  0x63   :  { %v2825_v12 = vpack.c.bf16 %v3229_v8, %v3227_v61  ;;  %v3237_v54 = vand.u32 4294901760, %v3236_v50  ;;  %v3239_v1 = vand.u32 4294901760, %v3238_v60  ;;  %v3241_v25 = vand.u32 4294901760, %v3240_v26  ;;  %v3253_v8 = vld [vmem:[#allocation15_spill] sm:$0xff] }
  0x64   :  { %v2831_v35 = vpack.c.bf16 %v3233_v15, %v3231_v38  ;;  %v2104_v11 = vmov 0   ;;  %v1826_v42 = vpack.c.bf16 %v2346_v32, %v2333_v9  ;;  %v1970_v49 = vpack.c.bf16 %v2361_v0, %v2350_v3  ;;  %v3255_v38 = vld [vmem:[#allocation17_spill] sm:$0xff]  ;;  %v3257_v15 = vld [vmem:[#allocation19_spill] sm:$0xff] }
  0x65   :  { %v2837_v58 = vpack.c.bf16 %v3237_v54, %v3235_v45  ;;  %v2843_v41 = vpack.c.bf16 %v3241_v25, %v3239_v1  ;;  %2102 = vset.pattern.permute.xlu0 %v2104_v11  ;;  %v1828_v53 = vpack.c.bf16 %v2367_v43, %v2365_v2  ;;  %v1972_v61 = vpack.c.bf16 %v2383_v57, %v2371_v34  ;;  %v3242_v2 = vld [vmem:[#allocation2_spill] sm:$0xff]  ;;  %v3243_v43 = vld [vmem:[#allocation4_spill] sm:$0xff]  ;;  %v3259_v45 = vld [vmem:[#allocation21_spill] sm:$0xff] }
  0x66   :  { %44 = vperm.xlu0 %2102, %v16_v33   ;;  %1827 = vmatpush1.bf16.msra.mxu0 %v1826_v42  ;;  %v1830_v9 = vpack.c.bf16 %v2398_v10, %v2387_v5  ;;  %v1974_v3 = vpack.c.bf16 %v3225_v51, %v2402_v4  ;;  %v1832_v32 = vpack.c.bf16 %v3228_v46, %v2408_v48  ;;  %v3244_v48 = vld [vmem:[#allocation39_spill] sm:$0xff]  ;;  %v3245_v57 = vld [vmem:[#allocation6_spill] sm:$0xff]  ;;  %v3247_v4 = vld [vmem:[#allocation8_spill] sm:$0xff] }
  0x67   :  { %1971 = vmatpush1.bf16.msra.mxu1 %v1970_v49  ;;  %1829 = vmatprep.subr.bf16.mxu0 %v1828_v53  ;;  %v1976_v34 = vpack.c.bf16 %v3232_v14, %v3230_v6  ;;  %v1834_v0 = vpack.c.bf16 %v3236_v50, %v3234_v36  ;;  %v1978_v5 = vpack.c.bf16 %v3240_v26, %v3238_v60  ;;  %v3246_v10 = vld [vmem:[#allocation7_spill] sm:$0xff]  ;;  %v3251_v51 = vld [vmem:[#allocation12_spill] sm:$0xff]  ;;  %v3252_v46 = vld [vmem:[#allocation14_spill] sm:$0xff] }
  0x68   :  { %1973 = vmatprep.subr.bf16.mxu1 %v1972_v61  ;;  %v3254_v6 = vld [vmem:[#allocation16_spill] sm:$0xff]  ;;  %v3256_v14 = vld [vmem:[#allocation18_spill] sm:$0xff]  ;;  %v3261_v54 = vld [vmem:[#allocation23_spill] sm:$0xff] }
  0x69   :  { %v3258_v36 = vld [vmem:[#allocation20_spill] sm:$0xff]  ;;  %v3260_v50 = vld [vmem:[#allocation22_spill] sm:$0xff]  ;;  %v3263_v1 = vld [vmem:[#allocation25_spill] sm:$0xff] }
  0x6a   :  { %49 = vperm.xlu0 %2102, %v17_v63   ;;  %1831 = vmatpush1.bf16.msra.mxu0 %v1830_v9  ;;  %v3262_v60 = vld [vmem:[#allocation24_spill] sm:$0xff]  ;;  %v3264_v26 = vld [vmem:[#allocation27_spill] sm:$0xff]  ;;  %v3265_v25 = vld [vmem:[#allocation30_spill] sm:$0xff] }
  0x6b   :  { %1975 = vmatpush1.bf16.msra.mxu1 %v1974_v3  ;;  %1833 = vmatprep.subr.bf16.mxu0 %v1832_v32  ;;  %v3266_v11 = vld [vmem:[#allocation33_spill] sm:$0xff]  ;;  %v3267_v33 = vld [vmem:[#allocation36_spill] sm:$0xff]  ;;  %v3269_v49 = vld [vmem:[#allocation42_spill] sm:$0xff] }
  0x6c   :  { %1977 = vmatprep.subr.bf16.mxu1 %v1976_v34  ;;  %v3268_v42 = vld [vmem:[#allocation40_spill] sm:$0xff] }
  0x6e   :  { %1835 = vmatpush1.bf16.msra.mxu0 %v1834_v0 }
  0x6f   :  { %1979 = vmatpush1.bf16.msra.mxu1 %v1978_v5  ;;  %1837 = vmatprep.subr.bf16.mxu0 %v3242_v2 }
  0x70   :  { %1981 = vmatprep.subr.bf16.mxu1 %v3243_v43 }
  0x71   :  { %491 = vmatmul.mubr.f32.vlgmr.msra.gmra.mrb[0].mxu0 %v3244_v48 }
  0x72   :  { %1340 = vmatmul.mubr.f32.vlgmr.msra.gmra.mrb[0].mxu1 %v3244_v48  ;;  %1839 = vmatpush1.bf16.msra.mxu0 %v3245_v57 }
  0x73   :  { %1983 = vmatpush1.bf16.msra.mxu1 %v3246_v10  ;;  %1841 = vmatprep.subr.bf16.mxu0 %v3247_v4 }
  0x74   :  { %1985 = vmatprep.subr.bf16.mxu1 %v3248_v44  ;;  %496 = vmatprep.mubr.f32.mxu0 %v3178_v21 }
  0x75   :  { %1345 = vmatprep.mubr.f32.mxu1 %v3178_v21  ;;  %499 = vmatmul.mubr.f32.gmra.mrb[2].mxu0 %v3249_v29 }
  0x76   :  { %1348 = vmatmul.mubr.f32.gmra.mrb[2].mxu1 %v3249_v29  ;;  %1843 = vmatpush1.bf16.msra.mxu0 %v3250_v59 }
  0x77   :  { %1987 = vmatpush1.bf16.msra.mxu1 %v3251_v51  ;;  %1845 = vmatprep.subr.bf16.mxu0 %v3252_v46 }
  0x78   :  { %1989 = vmatprep.subr.bf16.mxu1 %v3253_v8  ;;  %593 = vmatprep.mubr.f32.mxu0 %v3178_v21 }
  0x79   :  { %1442 = vmatprep.mubr.f32.mxu1 %v3178_v21 }
  0x7a   :  { %1847 = vmatpush1.bf16.msra.mxu0 %v3254_v6 }
  0x7b   :  { %1991 = vmatpush1.bf16.msra.mxu1 %v3255_v38  ;;  %1849 = vmatprep.subr.bf16.mxu0 %v3256_v14 }
  0x7c   :  { %1993 = vmatprep.subr.bf16.mxu1 %v3257_v15 }
  0x7e   :  { %1851 = vmatpush1.bf16.msra.mxu0 %v3258_v36 }
  0x7f   :  { %1995 = vmatpush1.bf16.msra.mxu1 %v3259_v45  ;;  %1853 = vmatprep.subr.bf16.mxu0 %v3260_v50 }
  0x80   :  { %1997 = vmatprep.subr.bf16.mxu1 %v3261_v54 }
  0x82   :  { %1855 = vmatpush1.bf16.msra.mxu0 %v3262_v60 }
  0x83   :  { %1999 = vmatpush1.bf16.msra.mxu1 %v3263_v1  ;;  %1857 = vmatprep.subr.bf16.mxu0 %v3264_v26 }
  0x84   :  { %2001 = vmatprep.subr.bf16.mxu1 %v3265_v25 }
  0x86   :  { %1859 = vmatpush1.bf16.msra.mxu0 %v3266_v11 }
  0x87   :  { %2003 = vmatpush1.bf16.msra.mxu1 %v3267_v33  ;;  %1861 = vmatprep.subr.bf16.mxu0 %v2699_v22 }
  0x88   :  { %2005 = vmatprep.subr.bf16.mxu1 %v2705_v23 }
  0x89   :  { %597 = vmatmul.mubr.f32.vlgmr.msra.gmra.mrb[0].mxu0 %v3268_v42 }
  0x8a   :  { %1446 = vmatmul.mubr.f32.vlgmr.msra.gmra.mrb[0].mxu1 %v3268_v42  ;;  %1863 = vmatpush1.bf16.msra.mxu0 %v2711_v39 }
  0x8b   :  { %2007 = vmatpush1.bf16.msra.mxu1 %v2719_v27  ;;  %1865 = vmatprep.subr.bf16.mxu0 %v2725_v30 }
  0x8c   :  { %2009 = vmatprep.subr.bf16.mxu1 %v2731_v28  ;;  %602 = vmatprep.mubr.f32.mxu0 %v3178_v21 }
  0x8d   :  { %1451 = vmatprep.mubr.f32.mxu1 %v3178_v21  ;;  %606 = vmatmul.mubr.f32.gmra.mrb[2].mxu0 %v3269_v49 }
  0x8e   :  { %1455 = vmatmul.mubr.f32.gmra.mrb[2].mxu1 %v3269_v49  ;;  %1867 = vmatpush1.bf16.msra.mxu0 %v2737_v52 }
  0x8f   :  { %2011 = vmatpush1.bf16.msra.mxu1 %v2743_v55  ;;  %1869 = vmatprep.subr.bf16.mxu0 %v2749_v19 }
  0x90   :  { %2013 = vmatprep.subr.bf16.mxu1 %v2755_v20  ;;  %748 = vmatprep.mubr.f32.mxu0 %v3178_v21 }
  0x91   :  { %1597 = vmatprep.mubr.f32.mxu1 %v3178_v21 }
  0x92   :  { %1871 = vmatpush1.bf16.msra.mxu0 %v2761_v13 }
  0x93   :  { %2015 = vmatpush1.bf16.msra.mxu1 %v2767_v17  ;;  %1873 = vmatprep.subr.bf16.mxu0 %v2775_v37 }
  0x94   :  { %2017 = vmatprep.subr.bf16.mxu1 %v2781_v24 }
  0x96   :  { %1875 = vmatpush1.bf16.msra.mxu0 %v2787_v18 }
  0x97   :  { %2019 = vmatpush1.bf16.msra.mxu1 %v2795_v7  ;;  %1877 = vmatprep.subr.bf16.mxu0 %v2801_v56 }
  0x98   :  { %2021 = vmatprep.subr.bf16.mxu1 %v2807_v40 }
  0x9a   :  { %1879 = vmatpush1.bf16.msra.mxu0 %v2813_v47 }
  0x9b   :  { %2023 = vmatpush1.bf16.msra.mxu1 %v2819_v62  ;;  %1881 = vmatprep.subr.bf16.mxu0 %v2825_v12 }
  0x9c   :  { %2025 = vmatprep.subr.bf16.mxu1 %v2831_v35 }
  0x9e   :  { %1883 = vmatpush1.bf16.msra.mxu0 %v2837_v58 }
  0x9f   :  { %2027 = vmatpush1.bf16.msra.mxu1 %v2843_v41  ;;  %1885 = vmatprep.subr.bf16.mxu0 %v3242_v2 }
  0xa0   :  { %2029 = vmatprep.subr.bf16.mxu1 %v3243_v43 }
  0xa1   :  { %750 = vmatmul.mubr.f32.vlgmr.msra.gmra.mrb[0].mxu0 %v3191_v31 }
  0xa2   :  { %1599 = vmatmul.mubr.f32.vlgmr.msra.gmra.mrb[0].mxu1 %v3191_v31  ;;  %1887 = vmatpush1.bf16.msra.mxu0 %v3245_v57 }
  0xa3   :  { %2031 = vmatpush1.bf16.msra.mxu1 %v3246_v10  ;;  %1889 = vmatprep.subr.bf16.mxu0 %v3247_v4 }
  0xa4   :  { %2033 = vmatprep.subr.bf16.mxu1 %v3248_v44  ;;  %755 = vmatprep.mubr.f32.mxu0 %v3178_v21 }
  0xa5   :  { %1604 = vmatprep.mubr.f32.mxu1 %v3178_v21  ;;  %757 = vmatmul.mubr.f32.gmra.mrb[2].mxu0 %v2639_v16 }
  0xa6   :  { %1606 = vmatmul.mubr.f32.gmra.mrb[2].mxu1 %v2639_v16  ;;  %1891 = vmatpush1.bf16.msra.mxu0 %v3250_v59 }
  0xa7   :  { %2035 = vmatpush1.bf16.msra.mxu1 %v3251_v51  ;;  %1893 = vmatprep.subr.bf16.mxu0 %v3252_v46 }
  0xa8   :  { %2037 = vmatprep.subr.bf16.mxu1 %v3253_v8  ;;  %851 = vmatprep.mubr.f32.mxu0 %v3178_v21 }
  0xa9   :  { %1700 = vmatprep.mubr.f32.mxu1 %v3178_v21 }
  0xaa   :  { %1895 = vmatpush1.bf16.msra.mxu0 %v3254_v6 }
  0xab   :  { %2039 = vmatpush1.bf16.msra.mxu1 %v3255_v38  ;;  %1897 = vmatprep.subr.bf16.mxu0 %v3256_v14 }
  0xac   :  { %2041 = vmatprep.subr.bf16.mxu1 %v3257_v15 }
  0xae   :  { %1899 = vmatpush1.bf16.msra.mxu0 %v3258_v36 }
  0xaf   :  { %2043 = vmatpush1.bf16.msra.mxu1 %v3259_v45  ;;  %1901 = vmatprep.subr.bf16.mxu0 %v3260_v50 }
  0xb0   :  { %2045 = vmatprep.subr.bf16.mxu1 %v3261_v54 }
  0xb2   :  { %1903 = vmatpush1.bf16.msra.mxu0 %v3262_v60 }
  0xb3   :  { %2047 = vmatpush1.bf16.msra.mxu1 %v3263_v1  ;;  %1905 = vmatprep.subr.bf16.mxu0 %v3264_v26 }
  0xb4   :  { %2049 = vmatprep.subr.bf16.mxu1 %v3265_v25 }
  0xb6   :  { %1907 = vmatpush1.bf16.msra.mxu0 %v3266_v11 }
  0xb7   :  { %2051 = vmatpush1.bf16.msra.mxu1 %v3267_v33 }
  0xb9   :  { %853 = vmatmul.mubr.f32.vlgmr.msra.gmra.mrb[0].mxu0 %v3191_v31 }
  0xba   :  { %1702 = vmatmul.mubr.f32.vlgmr.msra.gmra.mrb[0].mxu1 %v3191_v31  ;;  %858 = vmatprep.mubr.f32.mxu0 %v3178_v21 }
  0xbb   :  { %1707 = vmatprep.mubr.f32.mxu1 %v3178_v21 }
  0xbd   :  { %860 = vmatmul.mubr.f32.gmra.mrb[2].mxu0 %v2639_v16 }
  0xbe   :  { %1709 = vmatmul.mubr.f32.gmra.mrb[2].mxu1 %v2639_v16 }
  0xe5   :  { %v45_v23 = vpop.permute.xlu0 %44 }
  0xe9   :  { %v50_v13 = vpop.permute.xlu0 %49 }
 0x18c   :  { %v854_v22 = vpop.f32.mrb[0].mxu0 }
 0x18d   :  { %v1703_v39 = vpop.f32.mrb[0].mxu1  ;;  %v2052_v27 = vadd.f32 %v854_v22, %v45_v23  ;;  %v856_v28 = vpop.f32.mrb[1].mxu0 }
 0x18e   :  { %v2056_v30 = vadd.f32 %v1703_v39, %v45_v23  ;;  %v1705_v52 = vpop.f32.mrb[1].mxu1  ;;  %v2053_v55 = vadd.f32 %v856_v28, %v45_v23 }
 0x18f   :  { %v2057_v19 = vadd.f32 %v1705_v52, %v45_v23  ;;  %vm866_vm3 = vcmp.ge.f32.partialorder %v2052_v27, 0.0  ;;  %v870_v31 = vmul.f32 0.01, %v2052_v27 }
 0x190   :  { %vm1715_vm4 = vcmp.ge.f32.partialorder %v2056_v30, 0.0  ;;  %v1719_v20 = vmul.f32 0.01, %v2056_v30  ;;  %vm867_vm5 = vcmp.ge.f32.partialorder %v2053_v55, 0.0  ;;  %v871_v21 = vmul.f32 0.01, %v2053_v55 }
 0x191   :  { %vm1716_vm6 = vcmp.ge.f32.partialorder %v2057_v19, 0.0  ;;  %v1720_v17 = vmul.f32 0.01, %v2057_v19  ;;  %v874_v16 = vsel %vm866_vm3, %v2052_v27, %v870_v31  ;;  %v861_v24 = vpop.f32.mrb[2].mxu0  ;;  %v1710_v18 = vpop.f32.mrb[2].mxu1 }
 0x192   :  { %v1723_v37 = vsel %vm1715_vm4, %v2056_v30, %v1719_v20  ;;  %878 = vst [vmem:[%s3006_s3] sm:$0xff] %v874_v16  ;;  %v875_v7 = vsel %vm867_vm5, %v2053_v55, %v871_v21  ;;  %v2054_v40 = vadd.f32 %v861_v24, %v50_v13  ;;  %v2058_v47 = vadd.f32 %v1710_v18, %v50_v13  ;;  %v863_v62 = vpop.f32.mrb[3].mxu0  ;;  %v1712_v12 = vpop.f32.mrb[3].mxu1 }
 0x193   :  { %1760 = vst [vmem:[%s3006_s3 + $0x20] sm:$0xff] %v1723_v37  ;;  %v1724_v56 = vsel %vm1716_vm6, %v2057_v19, %v1720_v17  ;;  %880 = vst.msk [vmem:[%s3006_s3 + $0x8] sm:$0xff] %vm879_vm2, %v875_v7  ;;  %v2055_v35 = vadd.f32 %v863_v62, %v50_v13  ;;  %v2059_v58 = vadd.f32 %v1712_v12, %v50_v13 }
 0x194   :  { %1761 = vst.msk [vmem:[%s3006_s3 + $0x28] sm:$0xff] %vm879_vm2, %v1724_v56  ;;  %vm868_vm8 = vcmp.ge.f32.partialorder %v2054_v40, 0.0  ;;  %v872_v41 = vmul.f32 0.01, %v2054_v40  ;;  %vm1717_vm9 = vcmp.ge.f32.partialorder %v2058_v47, 0.0 }
 0x195   :  { %v1721_v53 = vmul.f32 0.01, %v2058_v47  ;;  %vm869_vm10 = vcmp.ge.f32.partialorder %v2055_v35, 0.0  ;;  %v873_v61 = vmul.f32 0.01, %v2055_v35  ;;  %vm1718_vm11 = vcmp.ge.f32.partialorder %v2059_v58, 0.0 }
 0x196   :  { %v1722_v63 = vmul.f32 0.01, %v2059_v58  ;;  %v876_v9 = vsel %vm868_vm8, %v2054_v40, %v872_v41 }
 0x197   :  { %v1725_v3 = vsel %vm1717_vm9, %v2058_v47, %v1721_v53  ;;  %881 = vst [vmem:[%s3006_s3 + $0x10] sm:$0x3] %v876_v9  ;;  %v877_v32 = vsel %vm869_vm10, %v2055_v35, %v873_v61 }
 0x198   :  { %1762 = vst [vmem:[%s3006_s3 + $0x30] sm:$0x3] %v1725_v3  ;;  %v1726_v34 = vsel %vm1718_vm11, %v2059_v58, %v1722_v63  ;;  %883 = vst.msk [vmem:[%s3006_s3 + $0x18] sm:$0x3] %vm882_vm7, %v877_v32 }
 0x199   :  { %1763 = vst.msk [vmem:[%s3006_s3 + $0x38] sm:$0x3] %vm882_vm7, %v1726_v34 }

</bundles_post_ra>
